<compile_context>
chip_gen: v7x
topology: tpu7x:2x2x1
jax: 0.10.0
libtpu: 0.0.40
codegen_flags: <defaults>
</compile_context>

<pallas_src>
import functools

import jax
import jax.numpy as jnp
from jax.experimental import pallas as pl
from jax.experimental.pallas import tpu as pltpu


def _mlp_kernel(x_ref, w1_ref, b1_ref, w2_ref, b2_ref, w3_ref, b3_ref, o_ref):
    # fc1 (bf16 inputs, f32 accumulate) + bias + ReLU in f32
    h1 = jnp.dot(x_ref[...], w1_ref[...], preferred_element_type=jnp.float32)
    h1 = jnp.maximum(h1 + b1_ref[...], 0.0).astype(jnp.bfloat16)
    # fc2 + bias + ReLU
    h2 = jnp.dot(h1, w2_ref[...], preferred_element_type=jnp.float32)
    h2 = jnp.maximum(h2 + b2_ref[...], 0.0).astype(jnp.bfloat16)
    # fc3 (logits, no activation), f32 accumulate + f32 bias
    o = jnp.dot(h2, w3_ref[...], preferred_element_type=jnp.float32) + b3_ref[...]
    o_ref[...] = o.astype(o_ref.dtype)


@functools.partial(jax.jit, static_argnames=("block_b",))
def parkinsons_net_forward(x, params, block_b=1024):
    """ParkinsonsNet forward: Linear(D,128)+ReLU -> Linear(128,64)+ReLU -> Linear(64,2)."""
    w1, b1, w2, b2, w3, b3 = params
    B, D = x.shape
    H1 = w1.shape[1]   # 128
    H2 = w2.shape[1]   # 64
    O = w3.shape[1]    # 2

    # Effective batch tile: big for throughput, clamped to B for small inputs.
    # If the tile is smaller than B it must be a multiple of 8 (sublane tiling).
    if block_b >= B:
        bb = B                       # full-extent block: always legal
    else:
        bb = max(8, (block_b // 8) * 8)

    # bf16 on the HBM-dominant operands; biases stay f32 (f32 bias-add/ReLU).
    x_lp = x.astype(jnp.bfloat16)
    w1_lp = w1.astype(jnp.bfloat16)
    w2_lp = w2.astype(jnp.bfloat16)
    w3_lp = w3.astype(jnp.bfloat16)

    grid = (pl.cdiv(B, bb),)

    return pl.pallas_call(
        _mlp_kernel,
        out_shape=jax.ShapeDtypeStruct((B, O), jnp.float32),
        grid=grid,
        in_specs=[
            # batch tile of activations
            pl.BlockSpec((bb, D), lambda i: (i, 0)),
            # weights / biases: full arrays, VMEM-resident for every tile
            pl.BlockSpec((D, H1), lambda i: (0, 0)),
            pl.BlockSpec((1, H1), lambda i: (0, 0)),
            pl.BlockSpec((H1, H2), lambda i: (0, 0)),
            pl.BlockSpec((1, H2), lambda i: (0, 0)),
            pl.BlockSpec((H2, O), lambda i: (0, 0)),
            pl.BlockSpec((1, O), lambda i: (0, 0)),
        ],
        out_specs=pl.BlockSpec((bb, O), lambda i: (i, 0)),
        compiler_params=pltpu.CompilerParams(
            dimension_semantics=("parallel",),
            vmem_limit_bytes=64 << 20,
        ),
    )(x_lp, w1_lp, b1, w2_lp, b2, w3_lp, b3)


def init_params(key, input_dim):
    """Deterministic init mimicking nn.Linear default (uniform +-1/sqrt(fan_in))."""
    sizes = [(input_dim, 128), (128, 64), (64, 2)]
    params = []
    for (fan_in, fan_out) in sizes:
        key, kw, kb = jax.random.split(key, 3)
        bound = 1.0 / jnp.sqrt(fan_in)
        w = jax.random.uniform(kw, (fan_in, fan_out), jnp.float32, -bound, bound)
        b = jax.random.uniform(kb, (1, fan_out), jnp.float32, -bound, bound)
        params += [w, b]
    return tuple(params)


def reference_forward_f32(x, params):
    w1, b1, w2, b2, w3, b3 = params
    h1 = jnp.maximum(x @ w1 + b1, 0.0)
    h2 = jnp.maximum(h1 @ w2 + b2, 0.0)
    return h2 @ w3 + b3


def reference_forward_bf16(x, params):
    """Mirrors the kernel's bf16-input / f32-accumulate numerics."""
    w1, b1, w2, b2, w3, b3 = params
    bf = jnp.bfloat16
    h1 = jnp.dot(x.astype(bf), w1.astype(bf), preferred_element_type=jnp.float32)
    h1 = jnp.maximum(h1 + b1, 0.0).astype(bf)
    h2 = jnp.dot(h1, w2.astype(bf), preferred_element_type=jnp.float32)
    h2 = jnp.maximum(h2 + b2, 0.0).astype(bf)
    return jnp.dot(h2, w3.astype(bf), preferred_element_type=jnp.float32) + b3


if __name__ == "__main__":
    key = jax.random.PRNGKey(0)
    k_in, k_params = jax.random.split(key)

    batch = 16
    input_dim = 32  # ParkinsonsNet feature dimension (small synthetic choice)

    x = jax.random.normal(k_in, (batch, input_dim), jnp.float32)
    params = init_params(k_params, input_dim)

    out = parkinsons_net_forward(x, params)
    out = jax.block_until_ready(out)

    assert out.shape == (batch, 2), out.shape

    # Tight check vs a reference using the same bf16-input / f32-acc numerics.
    ref_bf16 = reference_forward_bf16(x, params)
    assert jnp.allclose(out, ref_bf16, atol=2e-3, rtol=2e-3), "mismatch vs bf16 reference"

    # Loose sanity check vs the pure-f32 reference.
    ref_f32 = reference_forward_f32(x, params)
    assert jnp.allclose(out, ref_f32, atol=5e-2, rtol=5e-2), "mismatch vs f32 reference"

    print("KERNEL_OK")
</pallas_src>

<mosaic_0001>
module attributes {stable_mosaic.version = 11 : i64} {
  func.func @_mlp_kernel(%arg0: i32, %arg1: memref<16x32xbf16, #tpu.memory_space<vmem>>, %arg2: memref<32x128xbf16, #tpu.memory_space<vmem>>, %arg3: memref<1x128xf32, #tpu.memory_space<vmem>>, %arg4: memref<128x64xbf16, #tpu.memory_space<vmem>>, %arg5: memref<1x64xf32, #tpu.memory_space<vmem>>, %arg6: memref<64x2xbf16, #tpu.memory_space<vmem>>, %arg7: memref<1x2xf32, #tpu.memory_space<vmem>>, %arg8: memref<16x2xf32, #tpu.memory_space<vmem>>) attributes {dimension_semantics = [#tpu.dimension_semantics<parallel>], iteration_bounds = array<i64: 1>, scalar_prefetch = 0 : i64, scratch_operands = 0 : i64, tpu.core_type = #tpu.core_type<tc>, window_params = [{transform_indices = @transform_0, window_bounds = array<i64: 16, 32>}, {pipeline_mode = #tpu.pipeline_mode<synchronous>, transform_indices = @transform_1, window_bounds = array<i64: 32, 128>}, {pipeline_mode = #tpu.pipeline_mode<synchronous>, transform_indices = @transform_2, window_bounds = array<i64: 1, 128>}, {pipeline_mode = #tpu.pipeline_mode<synchronous>, transform_indices = @transform_3, window_bounds = array<i64: 128, 64>}, {pipeline_mode = #tpu.pipeline_mode<synchronous>, transform_indices = @transform_4, window_bounds = array<i64: 1, 64>}, {pipeline_mode = #tpu.pipeline_mode<synchronous>, transform_indices = @transform_5, window_bounds = array<i64: 64, 2>}, {pipeline_mode = #tpu.pipeline_mode<synchronous>, transform_indices = @transform_6, window_bounds = array<i64: 1, 2>}, {transform_indices = @transform_7, window_bounds = array<i64: 16, 2>}]} {
    %c0 = arith.constant 0 : index
    %c0_0 = arith.constant 0 : index
    %0 = vector.load %arg1[%c0, %c0_0] : memref<16x32xbf16, #tpu.memory_space<vmem>>, vector<16x32xbf16>
    %c0_1 = arith.constant 0 : index
    %c0_2 = arith.constant 0 : index
    %1 = vector.load %arg2[%c0_1, %c0_2] : memref<32x128xbf16, #tpu.memory_space<vmem>>, vector<32x128xbf16>
    %cst = arith.constant dense<0.000000e+00> : vector<16x128xf32>
    %2 = tpu.matmul %0, %1, %cst {dimension_numbers = #tpu.dot_dimension_numbers<[1], [0], [0], [1], [0, 0, 1, 1], [], []>} : vector<16x32xbf16>, vector<32x128xbf16>, vector<16x128xf32> -> vector<16x128xf32>
    %c0_3 = arith.constant 0 : index
    %c0_4 = arith.constant 0 : index
    %3 = vector.load %arg3[%c0_3, %c0_4] : memref<1x128xf32, #tpu.memory_space<vmem>>, vector<1x128xf32>
    %4 = vector.broadcast %3 : vector<1x128xf32> to vector<16x128xf32>
    %5 = arith.addf %2, %4 : vector<16x128xf32>
    %cst_5 = arith.constant 0.000000e+00 : f32
    %6 = vector.broadcast %cst_5 : f32 to vector<16x128xf32>
    %7 = arith.maximumf %5, %6 : vector<16x128xf32>
    %8 = arith.truncf %7 : vector<16x128xf32> to vector<16x128xbf16>
    %c0_6 = arith.constant 0 : index
    %c0_7 = arith.constant 0 : index
    %9 = vector.load %arg4[%c0_6, %c0_7] : memref<128x64xbf16, #tpu.memory_space<vmem>>, vector<128x64xbf16>
    %cst_8 = arith.constant dense<0.000000e+00> : vector<16x64xf32>
    %10 = tpu.matmul %8, %9, %cst_8 {dimension_numbers = #tpu.dot_dimension_numbers<[1], [0], [0], [1], [0, 0, 1, 1], [], []>} : vector<16x128xbf16>, vector<128x64xbf16>, vector<16x64xf32> -> vector<16x64xf32>
    %c0_9 = arith.constant 0 : index
    %c0_10 = arith.constant 0 : index
    %11 = vector.load %arg5[%c0_9, %c0_10] : memref<1x64xf32, #tpu.memory_space<vmem>>, vector<1x64xf32>
    %12 = vector.broadcast %11 : vector<1x64xf32> to vector<16x64xf32>
    %13 = arith.addf %10, %12 : vector<16x64xf32>
    %cst_11 = arith.constant 0.000000e+00 : f32
    %14 = vector.broadcast %cst_11 : f32 to vector<16x64xf32>
    %15 = arith.maximumf %13, %14 : vector<16x64xf32>
    %16 = arith.truncf %15 : vector<16x64xf32> to vector<16x64xbf16>
    %c0_12 = arith.constant 0 : index
    %c0_13 = arith.constant 0 : index
    %17 = vector.load %arg6[%c0_12, %c0_13] : memref<64x2xbf16, #tpu.memory_space<vmem>>, vector<64x2xbf16>
    %cst_14 = arith.constant dense<0.000000e+00> : vector<16x2xf32>
    %18 = tpu.matmul %16, %17, %cst_14 {dimension_numbers = #tpu.dot_dimension_numbers<[1], [0], [0], [1], [0, 0, 1, 1], [], []>} : vector<16x64xbf16>, vector<64x2xbf16>, vector<16x2xf32> -> vector<16x2xf32>
    %c0_15 = arith.constant 0 : index
    %c0_16 = arith.constant 0 : index
    %19 = vector.load %arg7[%c0_15, %c0_16] : memref<1x2xf32, #tpu.memory_space<vmem>>, vector<1x2xf32>
    %20 = vector.broadcast %19 : vector<1x2xf32> to vector<16x2xf32>
    %21 = arith.addf %18, %20 : vector<16x2xf32>
    %c0_17 = arith.constant 0 : index
    %c0_18 = arith.constant 0 : index
    %22 = vector.load %arg8[%c0_17, %c0_18] : memref<16x2xf32, #tpu.memory_space<vmem>>, vector<16x2xf32>
    tpu.vector_store %arg8[%c0_17, %c0_18], %21 {strides = array<i32>} : memref<16x2xf32, #tpu.memory_space<vmem>>, vector<16x2xf32>,
    return
  }
  func.func @transform_0(%arg0: i32) -> (i32, i32) {
    %c0_i32 = arith.constant 0 : i32
    %c0_i32_0 = arith.constant 0 : i32
    return %arg0, %c0_i32 : i32, i32
  }
  func.func @transform_1(%arg0: i32) -> (i32, i32) {
    %c0_i32 = arith.constant 0 : i32
    %c0_i32_0 = arith.constant 0 : i32
    %c0_i32_1 = arith.constant 0 : i32
    return %c0_i32, %c0_i32_0 : i32, i32
  }
  func.func @transform_2(%arg0: i32) -> (i32, i32) {
    %c0_i32 = arith.constant 0 : i32
    %c0_i32_0 = arith.constant 0 : i32
    %c0_i32_1 = arith.constant 0 : i32
    return %c0_i32, %c0_i32_0 : i32, i32
  }
  func.func @transform_3(%arg0: i32) -> (i32, i32) {
    %c0_i32 = arith.constant 0 : i32
    %c0_i32_0 = arith.constant 0 : i32
    %c0_i32_1 = arith.constant 0 : i32
    return %c0_i32, %c0_i32_0 : i32, i32
  }
  func.func @transform_4(%arg0: i32) -> (i32, i32) {
    %c0_i32 = arith.constant 0 : i32
    %c0_i32_0 = arith.constant 0 : i32
    %c0_i32_1 = arith.constant 0 : i32
    return %c0_i32, %c0_i32_0 : i32, i32
  }
  func.func @transform_5(%arg0: i32) -> (i32, i32) {
    %c0_i32 = arith.constant 0 : i32
    %c0_i32_0 = arith.constant 0 : i32
    %c0_i32_1 = arith.constant 0 : i32
    return %c0_i32, %c0_i32_0 : i32, i32
  }
  func.func @transform_6(%arg0: i32) -> (i32, i32) {
    %c0_i32 = arith.constant 0 : i32
    %c0_i32_0 = arith.constant 0 : i32
    %c0_i32_1 = arith.constant 0 : i32
    return %c0_i32, %c0_i32_0 : i32, i32
  }
  func.func @transform_7(%arg0: i32) -> (i32, i32) {
    %c0_i32 = arith.constant 0 : i32
    %c0_i32_0 = arith.constant 0 : i32
    return %arg0, %c0_i32 : i32, i32
  }
}

</mosaic_0001>

<bundles_post_ra>
// kernel: parkinsons_net_forward.1
= control target key start
LH: loop header
LB: loop body
LE: loop exit
PB: predicated region body
PF: predicated region fallthrough
CT: control target
= control target key end

     0   :  { %12 = vsyncpa [#allocation3], 0  ;;  %s888_s0 = inlined_call_operand.hbm [shape: bf16[16,32], index: 0, kind: input, shape index: {}]   ;;  %s889_s1 = inlined_call_operand.hbm [shape: bf16[32,128], index: 1, kind: input, shape index: {}]   ;;  %s890_s2 = inlined_call_operand.hbm [shape: f32[1,128], index: 2, kind: input, shape index: {}]   ;;  %s891_s3 = inlined_call_operand.hbm [shape: bf16[128,64], index: 3, kind: input, shape index: {}]   ;;  %s892_s4 = inlined_call_operand.hbm [shape: f32[1,64], index: 4, kind: input, shape index: {}]   ;;  %s893_s5 = inlined_call_operand.hbm [shape: bf16[64,2], index: 5, kind: input, shape index: {}]   ;;  %s894_s6 = inlined_call_operand.hbm [shape: f32[1,2], index: 6, kind: input, shape index: {}]   ;;  %s895_s7 = inlined_call_operand.hbm [shape: f32[16,2], index: 7, kind: output, shape index: {}]  }
   0x1   :  { %13 = vsyncpa [#allocation6], 0 }
   0x2   :  { %14 = vsyncpa [#allocation9], 0 }
   0x3   :  { %15 = vsyncpa [#allocation12], 0 }
   0x4   :  { %16 = vsyncpa [#allocation4], 0  ;;  %s709_s24 = smov [#allocation5]   ;;  %s710_s26 = smov [#allocation8]  }
   0x5   :  { %s34_s25 = sshll.u32 %s709_s24, 4  ;;  %s56_s27 = sshll.u32 %s710_s26, 4  ;;  %s35_s25 = int_to_ptr.vmem [resolvable:$true] %s34_s25  ;;  %s763_s27 = int_to_ptr.vmem [resolvable:$true] %s56_s27 }
   0x6   :  { %s523_s30 = scalar_lea.hbm %s889_s1, 256 }
   0x7   :  { %p524_p0 = scmp.ne.s32.totalorder %s889_s1, %s523_s30  ;;  %p527_p1 = scmp.lt.u32.totalorder %s523_s30, %s889_s1 }
   0x9   :  { %p529_p2 = pnand %p527_p1, %p524_p0 }
   0xb   :  { %532 = shalt.err (!%p529_p2)
}
   0xc   :  { %s533_s12 = scalar_lea.vmem %s35_s25, 256  ;;  %p538_p4 = scmp.lt.s32.totalorder %s35_s25, %s35_s25 }
   0xd   :  { %p534_p3 = scmp.ne.s32.totalorder %s35_s25, %s533_s12  ;;  %p539_p5 = scmp.lt.s32.totalorder %s533_s12, %s533_s12 }
   0xf   :  { %p540_p6 = por %p539_p5, %p538_p4 }
  0x11   :  { %p541_p7 = pnand %p540_p6, %p534_p3 }
  0x13   :  { %544 = shalt.err (!%p541_p7)
}
  0x14   :  { %s711_s13 = smov 64   ;;  %s712_s14 = smov 4  }
  0x15   :  { %40 = dma.hbm_to_vmem [thread:$0]  %s889_s1, 256, %s35_s25, [#allocation6], %s711_s13, %s711_s13, %s712_s14  }
  0x16   :  { %s545_s19 = scalar_lea.hbm %s891_s3, 1024 }
  0x17   :  { %p546_p8 = scmp.ne.s32.totalorder %s891_s3, %s545_s19  ;;  %p549_p9 = scmp.lt.u32.totalorder %s545_s19, %s891_s3 }
  0x19   :  { %p551_p10 = pnand %p549_p9, %p546_p8 }
  0x1b   :  { %554 = shalt.err (!%p551_p10)
}
  0x1c   :  { %s555_s24 = scalar_lea.vmem %s763_s27, 1024  ;;  %p560_p12 = scmp.lt.s32.totalorder %s763_s27, %s763_s27 }
  0x1d   :  { %p556_p11 = scmp.ne.s32.totalorder %s763_s27, %s555_s24  ;;  %p561_p13 = scmp.lt.s32.totalorder %s555_s24, %s555_s24 }
  0x1f   :  { %p562_p0 = por %p561_p13, %p560_p12 }
  0x21   :  { %p563_p1 = pnand %p562_p0, %p556_p11 }
  0x23   :  { %566 = shalt.err (!%p563_p1)
}
  0x24   :  { %62 = dma.hbm_to_vmem [thread:$0]  %s891_s3, 1024, %s763_s27, [#allocation9], %s711_s13, %s711_s13, %s712_s14  }
  0x25   :  { %s713_s26 = smov [#allocation11]   ;;  %s714_s29 = smov [#allocation2]  }
  0x26   :  { %s78_s28 = sshll.u32 %s713_s26, 4  ;;  %s22_s30 = sshll.u32 %s714_s29, 4  ;;  %s79_s28 = int_to_ptr.vmem [resolvable:$true] %s78_s28  ;;  %s800_s30 = int_to_ptr.vmem [resolvable:$true] %s22_s30 }
  0x27   :  { %s567_s10 = scalar_lea.hbm %s893_s5, 512 }
  0x28   :  { %p568_p2 = scmp.ne.s32.totalorder %s893_s5, %s567_s10  ;;  %p571_p3 = scmp.lt.u32.totalorder %s567_s10, %s893_s5 }
  0x2a   :  { %p573_p4 = pnand %p571_p3, %p568_p2 }
  0x2c   :  { %576 = shalt.err (!%p573_p4)
}
  0x2d   :  { %s577_s3 = scalar_lea.vmem %s79_s28, 512  ;;  %p582_p6 = scmp.lt.s32.totalorder %s79_s28, %s79_s28 }
  0x2e   :  { %p578_p5 = scmp.ne.s32.totalorder %s79_s28, %s577_s3  ;;  %p583_p7 = scmp.lt.s32.totalorder %s577_s3, %s577_s3 }
  0x30   :  { %p584_p8 = por %p583_p7, %p582_p6 }
  0x32   :  { %p585_p9 = pnand %p584_p8, %p578_p5 }
  0x34   :  { %588 = shalt.err (!%p585_p9)
}
  0x35   :  { %84 = dma.hbm_to_vmem [thread:$0]  %s893_s5, 512, %s79_s28, [#allocation12], %s711_s13, %s711_s13, %s712_s14  }
  0x36   :  { %s589_s20 = scalar_lea.hbm %s888_s0, 128 }
  0x37   :  { %p590_p10 = scmp.ne.s32.totalorder %s888_s0, %s589_s20  ;;  %p593_p11 = scmp.lt.u32.totalorder %s589_s20, %s888_s0 }
  0x39   :  { %p595_p12 = pnand %p593_p11, %p590_p10 }
  0x3b   :  { %598 = shalt.err (!%p595_p12)
}
  0x3c   :  { %s599_s1 = scalar_lea.vmem %s800_s30, 128  ;;  %p604_p0 = scmp.lt.s32.totalorder %s800_s30, %s800_s30 }
  0x3d   :  { %p600_p13 = scmp.ne.s32.totalorder %s800_s30, %s599_s1  ;;  %p605_p1 = scmp.lt.s32.totalorder %s599_s1, %s599_s1 }
  0x3f   :  { %p606_p2 = por %p605_p1, %p604_p0 }
  0x41   :  { %p607_p3 = pnand %p606_p2, %p600_p13 }
  0x43   :  { %610 = shalt.err (!%p607_p3)
}
  0x44   :  { %28 = dma.hbm_to_vmem [thread:$0]  %s888_s0, 128, %s800_s30, [#allocation3], %s711_s13, %s711_s13, %s712_s14  }
  0x45   :  { %s715_s26 = smov [#allocation7]   ;;  %s716_s29 = smov [#allocation10]  }
  0x46   :  { %s47_s28 = sshll.u32 %s715_s26, 4  ;;  %s69_s8 = sshll.u32 %s716_s29, 4  ;;  %s48_s28 = int_to_ptr.vmem [resolvable:$true] %s47_s28  ;;  %s70_s8 = int_to_ptr.vmem [resolvable:$true] %s69_s8 }
  0x47   :  { %s611_s11 = scalar_lea.hbm %s890_s2, 16 }
  0x48   :  { %p612_p4 = scmp.ne.s32.totalorder %s890_s2, %s611_s11  ;;  %p615_p5 = scmp.lt.u32.totalorder %s611_s11, %s890_s2 }
  0x4a   :  { %p617_p6 = pnand %p615_p5, %p612_p4 }
  0x4c   :  { %620 = shalt.err (!%p617_p6)
}
  0x4d   :  { %s621_s0 = scalar_lea.vmem %s48_s28, 16  ;;  %s625_s13 = scalar_lea.vmem %s48_s28, 32 }
  0x4e   :  { %p622_p7 = scmp.ne.s32.totalorder %s48_s28, %s621_s0  ;;  %p626_p8 = scmp.lt.s32.totalorder %s48_s28, %s48_s28 }
  0x4f   :  { %p627_p9 = scmp.lt.s32.totalorder %s625_s13, %s621_s0 }
  0x51   :  { %p628_p10 = por %p627_p9, %p626_p8 }
  0x53   :  { %p629_p11 = pnand %p628_p10, %p622_p7 }
  0x55   :  { %632 = shalt.err (!%p629_p11)
}
  0x56   :  { %50 = dma.hbm_to_vmem [thread:$0]  %s890_s2, 16, %s48_s28, [#allocation6]  }
  0x57   :  { %s633_s18 = scalar_lea.hbm %s892_s4, 16 }
  0x58   :  { %p634_p12 = scmp.ne.s32.totalorder %s892_s4, %s633_s18  ;;  %p637_p13 = scmp.lt.u32.totalorder %s633_s18, %s892_s4 }
  0x5a   :  { %p639_p0 = pnand %p637_p13, %p634_p12 }
  0x5c   :  { %642 = shalt.err (!%p639_p0)
}
  0x5d   :  { %s643_s23 = scalar_lea.vmem %s70_s8, 16  ;;  %s647_s24 = scalar_lea.vmem %s70_s8, 32 }
  0x5e   :  { %p644_p1 = scmp.ne.s32.totalorder %s70_s8, %s643_s23  ;;  %p648_p2 = scmp.lt.s32.totalorder %s70_s8, %s70_s8 }
  0x5f   :  { %p649_p3 = scmp.lt.s32.totalorder %s647_s24, %s643_s23 }
  0x61   :  { %p650_p4 = por %p649_p3, %p648_p2 }
  0x63   :  { %p651_p5 = pnand %p650_p4, %p644_p1 }
  0x65   :  { %654 = shalt.err (!%p651_p5)
}
  0x66   :  { %72 = dma.hbm_to_vmem [thread:$0]  %s892_s4, 16, %s70_s8, [#allocation9]  }
  0x67   :  { %s717_s5 = smov [#allocation13]   ;;  %s655_s29 = scalar_lea.hbm %s894_s6, 16 }
  0x68   :  { %s91_s25 = sshll.u32 %s717_s5, 4  ;;  %p656_p6 = scmp.ne.s32.totalorder %s894_s6, %s655_s29  ;;  %s92_s25 = int_to_ptr.vmem [resolvable:$true] %s91_s25 }
  0x69   :  { %p659_p7 = scmp.lt.u32.totalorder %s655_s29, %s894_s6 }
  0x6b   :  { %p661_p8 = pnand %p659_p7, %p656_p6 }
  0x6d   :  { %664 = shalt.err (!%p661_p8)
}
  0x6e   :  { %s665_s15 = scalar_lea.vmem %s92_s25, 16  ;;  %s669_s4 = scalar_lea.vmem %s92_s25, 32 }
  0x6f   :  { %p666_p9 = scmp.ne.s32.totalorder %s92_s25, %s665_s15  ;;  %p670_p10 = scmp.lt.s32.totalorder %s92_s25, %s92_s25 }
  0x70   :  { %p671_p11 = scmp.lt.s32.totalorder %s669_s4, %s665_s15 }
  0x72   :  { %p672_p12 = por %p671_p11, %p670_p10 }
  0x74   :  { %p673_p13 = pnand %p672_p12, %p666_p9 }
  0x76   :  { %676 = shalt.err (!%p673_p13)
}
  0x77   :  { %94 = dma.hbm_to_vmem [thread:$0]  %s894_s6, 16, %s92_s25, [#allocation12]  }
  0x78   :  { %699 = dma.done.wait [#allocation3], 128  }
  0x79   :  { %700 = vsyncadd [#allocation3], 4294967168 }
  0x7a   :  { %701 = dma.done.wait [#allocation6], 272  }
  0x7b   :  { %702 = vsyncadd [#allocation6], 4294967024 }
  0x7c   :  { %703 = dma.done.wait [#allocation9], 1040  }
  0x7d   :  { %704 = vsyncadd [#allocation9], 4294966256 }
  0x7e   :  { %705 = dma.done.wait [#allocation12], 528  }
  0x7f   :  { %706 = vsyncadd [#allocation12], 4294966768  ;;  %v718_v0 = vmov 0.0   ;;  %vm719_vm0 = vmmov 0   ;;  %v508_v1 = vld [vmem:[#allocation5] sm:$0xff]   ;;  %v509_v2 = vld [vmem:[#allocation5 + $0x8] sm:$0xff]  }
  0x80   :  { %454 = vmatprep.subr.bf16.mxu0 %v718_v0  ;;  %458 = vmatprep.mubr.msk.bf16.mxu0 %vm719_vm0, %v718_v0  ;;  %v511_v3 = vld [vmem:[#allocation8] sm:$0xff]   ;;  %v512_v5 = vld [vmem:[#allocation8 + $0x8] sm:$0xff]   ;;  %vm147_vm1 = vcmask 261120   ;;  %v513_v6 = vld [vmem:[#allocation8 + $0x10] sm:$0xff]   ;;  %vm349_vm2 = vcmask 523264   ;;  %s720_s6 = smov [#allocation14]  }
  0x81   :  { %462 = vmatprep.subr.bf16.mxu1 %v718_v0  ;;  %478 = vmatprep.mubr.msk.bf16.mxu1 %vm719_vm0, %v718_v0  ;;  %v510_v4 = vld [vmem:[#allocation2] sm:$0xff]   ;;  %v514_v7 = vld [vmem:[#allocation8 + $0x18] sm:$0xff]   ;;  %v517_v10 = vld [vmem:[#allocation8 + $0x30] sm:$0xff]   ;;  %s402_s3 = sshll.u32 %s720_s6, 4  ;;  %vm394_vm3 = vcmask 15360   ;;  %s403_s3 = int_to_ptr.vmem [resolvable:$true] %s402_s3 }
  0x82   :  { %455 = vmatpush3.bf16.msra.mxu0 %v508_v1  ;;  %463 = vmatpush3.bf16.msra.mxu1 %v511_v3  ;;  %v515_v8 = vld [vmem:[#allocation8 + $0x20] sm:$0xff]   ;;  %v516_v9 = vld [vmem:[#allocation8 + $0x28] sm:$0xff]   ;;  %v518_v11 = vld [vmem:[#allocation8 + $0x38] sm:$0xff]   ;;  %s677_s0 = scalar_lea.vmem %s403_s3, 256  ;;  %p682_p1 = scmp.lt.s32.totalorder %s403_s3, %s403_s3 }
  0x83   :  { %456 = vmatprep.subr.bf16.mxu0 %v718_v0  ;;  %464 = vmatprep.subr.bf16.mxu1 %v718_v0  ;;  %v519_v12 = vld [vmem:[#allocation11] sm:$0xff]   ;;  %v520_v13 = vld [vmem:[#allocation11 + $0x8] sm:$0xff]   ;;  %v417_v14 = vld [vmem:[#allocation7] ss:$0 sm:$0xff]  ;;  %p678_p0 = scmp.ne.s32.totalorder %s403_s3, %s677_s0  ;;  %p683_p2 = scmp.lt.s32.totalorder %s677_s0, %s677_s0 }
  0x84   :  { %v521_v24 = vld [vmem:[#allocation11 + $0x10] sm:$0xff]   ;;  %v522_v25 = vld [vmem:[#allocation11 + $0x18] sm:$0xff]   ;;  %v431_v36 = vld [vmem:[#allocation13] ss:$0 sm:$0xff] }
  0x85   :  { %v422_v26 = vld [vmem:[#allocation10] ss:$0 sm:$0xff]  ;;  %p684_p3 = por %p683_p2, %p682_p1 }
  0x86   :  { %457 = vmatpush3.bf16.msra.mxu0 %v509_v2  ;;  %465 = vmatpush3.bf16.msra.mxu1 %v512_v5 }
  0x87   :  { %482 = vmatprep.subr.bf16.mxu0 %v718_v0  ;;  %466 = vmatprep.subr.bf16.mxu1 %v718_v0  ;;  %p685_p4 = pnand %p684_p3, %p678_p0 }
  0x89   :  { %459 = vmatmul.mubr.msk.bf16.vlgmr.msra.gmra.mrb[0].mxu0 %vm147_vm1, %v510_v4 }
  0x8a   :  { %490 = vmatprep.mubr.msk.bf16.mxu0 %vm719_vm0, %v718_v0  ;;  %467 = vmatpush3.bf16.msra.mxu1 %v513_v6 }
  0x8b   :  { %468 = vmatprep.subr.bf16.mxu1 %v718_v0  ;;  %483 = vmatpush3.bf16.msra.mxu0 %v519_v12 }
  0x8c   :  { %484 = vmatprep.subr.bf16.mxu0 %v718_v0 }
  0x8e   :  { %469 = vmatpush3.bf16.msra.mxu1 %v514_v7 }
  0x8f   :  { %470 = vmatprep.subr.bf16.mxu1 %v718_v0  ;;  %485 = vmatpush3.bf16.msra.mxu0 %v520_v13 }
  0x90   :  { %486 = vmatprep.subr.bf16.mxu0 %v718_v0 }
  0x92   :  { %471 = vmatpush3.bf16.msra.mxu1 %v515_v8 }
  0x93   :  { %472 = vmatprep.subr.bf16.mxu1 %v718_v0  ;;  %487 = vmatpush3.bf16.msra.mxu0 %v521_v24 }
  0x94   :  { %488 = vmatprep.subr.bf16.mxu0 %v718_v0 }
  0x96   :  { %473 = vmatpush3.bf16.msra.mxu1 %v516_v9 }
  0x97   :  { %474 = vmatprep.subr.bf16.mxu1 %v718_v0  ;;  %489 = vmatpush3.bf16.msra.mxu0 %v522_v25 }
  0x9a   :  { %475 = vmatpush3.bf16.msra.mxu1 %v517_v10 }
  0x9b   :  { %476 = vmatprep.subr.bf16.mxu1 %v718_v0 }
  0x9e   :  { %477 = vmatpush3.bf16.msra.mxu1 %v518_v11 }
 0x15c   :  { %v185_v15 = vpop.f32.mrb[0].mxu0 }
 0x15d   :  { %v186_v16 = vadd.f32 %v417_v14, %v185_v15  ;;  %v460_v17 = vpop.f32.mrb[1].mxu0 }
 0x15e   :  { %v188_v18 = vpop.f32.mrb[2].mxu0 }
 0x15f   :  { %v189_v19 = vadd.f32 %v417_v14, %v188_v18  ;;  %v461_v20 = vpop.f32.mrb[3].mxu0  ;;  %v192_v21 = vmax.f32 %v186_v16, 0.0 }
 0x161   :  { %v193_v22 = vmax.f32 %v189_v19, 0.0 }
 0x163   :  { %v194_v23 = vpack.c.bf16 %v193_v22, %v192_v21 }
 0x165   :  { %479 = vmatmul.mubr.bf16.vlgmr.msra.gmra.mrb[0].mxu1 %v194_v23 }
 0x238   :  { %v300_v27 = vpop.f32.mrb[0].mxu1 }
 0x239   :  { %v301_v28 = vadd.f32 %v422_v26, %v300_v27  ;;  %v480_v29 = vpop.f32.mrb[1].mxu1 }
 0x23a   :  { %v303_v30 = vpop.f32.mrb[2].mxu1 }
 0x23b   :  { %v304_v31 = vadd.f32 %v422_v26, %v303_v30  ;;  %v481_v32 = vpop.f32.mrb[3].mxu1  ;;  %v307_v33 = vmax.f32 %v301_v28, 0.0 }
 0x23d   :  { %v308_v34 = vmax.f32 %v304_v31, 0.0 }
 0x23f   :  { %v309_v35 = vpack.c.bf16 %v308_v34, %v307_v33 }
 0x241   :  { %491 = vmatmul.mubr.msk.bf16.vlgmr.msra.gmra.mrb[4].mxu0 %vm349_vm2, %v309_v35 }
 0x314   :  { %v387_v37 = vpop.f32.mrb[4].mxu0 }
 0x315   :  { %v388_v38 = vadd.f32 %v431_v36, %v387_v37  ;;  %v492_v39 = vpop.f32.mrb[5].mxu0 }
 0x316   :  { %v390_v40 = vpop.f32.mrb[6].mxu0 }
 0x317   :  { %395 = vst.msk [vmem:[#allocation14] sm:$0xff] %vm394_vm3, %v388_v38  ;;  %v391_v41 = vadd.f32 %v431_v36, %v390_v40  ;;  %v493_v42 = vpop.f32.mrb[7].mxu0 }
 0x319   :  { %396 = vst.msk [vmem:[#allocation14 + $0x8] sm:$0xff] %vm394_vm3, %v391_v41 }
 0x31a   :  { %688 = shalt.err (!%p685_p4)
}
 0x31b   :  { %s689_s30 = scalar_lea.hbm %s895_s7, 256 }
 0x31c   :  { %p690_p5 = scmp.ne.s32.totalorder %s895_s7, %s689_s30  ;;  %p693_p6 = scmp.lt.u32.totalorder %s689_s30, %s895_s7 }
 0x31e   :  { %p695_p7 = pnand %p693_p6, %p690_p5 }
 0x320   :  { %698 = shalt.err (!%p695_p7)
}
 0x321   :  { %s721_s20 = smov 128   ;;  %s722_s21 = smov 8  }
 0x322   :  { %408 = dma.vmem_to_hbm [thread:$0]  %s403_s3, 256, %s895_s7, [#allocation4], %s721_s20, %s721_s20, %s722_s21  }
 0x323   :  { %707 = dma.done.wait [#allocation4], 256  }
 0x324   :  { %708 = vsyncadd [#allocation4], 4294967040 }
 0x325   :  { %412 = vsyncpa [#allocation3], 1 }
 0x326   :  { %413 = vsyncpa [#allocation6], 1 }
 0x327   :  { %414 = vsyncpa [#allocation9], 1 }
 0x328   :  { %415 = vsyncpa [#allocation12], 1 }
 0x329   :  { %416 = vsyncpa [#allocation4], 1 }

</bundles_post_ra>
